<compile_context>
chip_gen: v5e
topology: v5e:2x2
jax: 0.10.0
libtpu: 0.0.40
codegen_flags: <defaults>
</compile_context>

<pallas_src>
import jax
import jax.numpy as jnp
from jax.experimental import pallas as pl
from jax.experimental.pallas import tpu as pltpu


def _maxpool2x2_kernel(x_ref, o_ref, t_ref):
    """One grid step pools a slab of 2*TR flattened input rows.

    x_ref : (2*TR, W)        2*TR consecutive rows of the (B*C*H, W) view
    o_ref : (TR, Wo)         TR pooled rows of the (B*C*Ho, Wo) output view
    t_ref : (W, TR) VMEM     staging buffer: W-on-sublanes for the lane-pair max
    """
    tr, wo = o_ref.shape

    # --- vertical (H) pair max: even/odd rows via strided sublane loads ---
    top = x_ref[pl.ds(0, tr, 2), :]          # rows 0, 2, 4, ...   (TR, W)
    bot = x_ref[pl.ds(1, tr, 2), :]          # rows 1, 3, 5, ...   (TR, W)
    m = jnp.maximum(top, bot)                # (TR, W)

    # --- horizontal (W) pair max ---
    # W pairs live on the lane dim; relayout through the XLU (idle otherwise):
    # transpose so W is on sublanes, take even/odd columns with strided
    # sublane loads, reduce, transpose back into the lane-dense output tile.
    t_ref[...] = m.T                         # (W, TR)
    left = t_ref[pl.ds(0, wo, 2), :]         # cols 0, 2, 4, ...   (Wo, TR)
    right = t_ref[pl.ds(1, wo, 2), :]        # cols 1, 3, 5, ...   (Wo, TR)
    o_ref[...] = jnp.maximum(left, right).T  # (TR, Wo)


def max_pool_block(x_nchw, *, max_in_block_bytes=4 * 1024 * 1024):
    """Equivalent of MaxPoolBlock.forward: MaxPool2d(kernel_size=2, stride=2).

    Input : (B, C, H, W)   (H, W even, as in the DeepLPF use case)
    Output: (B, C, H//2, W//2)
    """
    B, C, H, W = x_nchw.shape
    assert H % 2 == 0 and W % 2 == 0, "2x2/stride-2 pooling expects even H, W"
    Ho, Wo = H // 2, W // 2
    dtype = x_nchw.dtype
    itemsize = jnp.dtype(dtype).itemsize

    # Free row-major reshapes (no data movement): flatten to a 2-D problem.
    r_in = B * C * H
    r_out = B * C * Ho
    x2 = x_nchw.reshape(r_in, W)

    # Output rows per grid step: as large as the per-block VMEM budget allows
    # (input block = 2*TR*W elements, double-buffered by Pallas), but keep at
    # least 2 grid steps so pipelining / megacore sharding have work.
    cap_rows = max(8, max_in_block_bytes // (2 * W * itemsize))
    target_rows = max(8, r_out // 2) if r_out >= 16 else r_out
    tr = min(r_out, cap_rows, target_rows)
    if tr < r_out:
        tr = max(8, (tr // 8) * 8)        # keep (8, 128) tiling constraints happy
    n_steps = pl.cdiv(r_out, tr)
    # NB: if tr does not divide r_out, the trailing partial block only feeds
    # garbage into output rows that Pallas masks out on store (windows never
    # cross the block boundary), so correctness is preserved.

    out2 = pl.pallas_call(
        _maxpool2x2_kernel,
        out_shape=jax.ShapeDtypeStruct((r_out, Wo), dtype),
        grid_spec=pltpu.PrefetchScalarGridSpec(
            num_scalar_prefetch=0,
            grid=(n_steps,),
            in_specs=[pl.BlockSpec((2 * tr, W), lambda i: (i, 0))],
            out_specs=pl.BlockSpec((tr, Wo), lambda i: (i, 0)),
            scratch_shapes=[pltpu.VMEM((W, tr), dtype)],
        ),
        compiler_params=pltpu.CompilerParams(
            dimension_semantics=("parallel",),
            vmem_limit_bytes=32 * 1024 * 1024,
        ),
        cost_estimate=pl.CostEstimate(
            flops=3 * r_out * Wo,                 # 3 compares per output element
            transcendentals=0,
            bytes_accessed=(r_in * W + r_out * Wo) * itemsize,
        ),
    )(x2)

    return out2.reshape(B, C, Ho, Wo)


if __name__ == "__main__":
    key = jax.random.PRNGKey(0)
    B, C, H, W = 2, 4, 16, 16
    x = jax.random.normal(key, (B, C, H, W), dtype=jnp.float32)

    out = jax.block_until_ready(max_pool_block(x))

    # Pure-JAX reference for MaxPool2d(kernel_size=2, stride=2)
    ref = jnp.max(x.reshape(B, C, H // 2, 2, W // 2, 2), axis=(3, 5))

    assert out.shape == (B, C, H // 2, W // 2), out.shape
    assert out.dtype == x.dtype
    assert jnp.allclose(out, ref), "mismatch vs reference max pool"

    print("KERNEL_OK")
</pallas_src>

<mosaic_0001>
module attributes {stable_mosaic.version = 11 : i64} {
  func.func @_maxpool2x2_kernel(%arg0: i32, %arg1: memref<64x16xf32, #tpu.memory_space<vmem>>, %arg2: memref<32x8xf32, #tpu.memory_space<vmem>>, %arg3: memref<16x32xf32, #tpu.memory_space<vmem>>) attributes {dimension_semantics = [#tpu.dimension_semantics<parallel>], iteration_bounds = array<i64: 2>, scalar_prefetch = 0 : i64, scratch_operands = 1 : i64, tpu.core_type = #tpu.core_type<tc>, window_params = [{transform_indices = @transform_0, window_bounds = array<i64: 64, 16>}, {transform_indices = @transform_1, window_bounds = array<i64: 32, 8>}]} {
    %c0 = arith.constant 0 : index
    %c0_0 = arith.constant 0 : index
    %0 = tpu.strided_load %arg1[%c0, %c0_0] {strides = array<i32: 2, 1>} : memref<64x16xf32, #tpu.memory_space<vmem>>, vector<32x16xf32>
    %c1 = arith.constant 1 : index
    %c0_1 = arith.constant 0 : index
    %1 = tpu.strided_load %arg1[%c1, %c0_1] {strides = array<i32: 2, 1>} : memref<64x16xf32, #tpu.memory_space<vmem>>, vector<32x16xf32>
    %2 = arith.maximumf %0, %1 : vector<32x16xf32>
    %3 = tpu.transpose %2, [1, 0] : vector<32x16xf32> -> vector<16x32xf32>
    %c0_2 = arith.constant 0 : index
    %c0_3 = arith.constant 0 : index
    %4 = vector.load %arg3[%c0_2, %c0_3] : memref<16x32xf32, #tpu.memory_space<vmem>>, vector<16x32xf32>
    tpu.vector_store %arg3[%c0_2, %c0_3], %3 {strides = array<i32>} : memref<16x32xf32, #tpu.memory_space<vmem>>, vector<16x32xf32>,
    %c0_4 = arith.constant 0 : index
    %c0_5 = arith.constant 0 : index
    %5 = tpu.strided_load %arg3[%c0_4, %c0_5] {strides = array<i32: 2, 1>} : memref<16x32xf32, #tpu.memory_space<vmem>>, vector<8x32xf32>
    %c1_6 = arith.constant 1 : index
    %c0_7 = arith.constant 0 : index
    %6 = tpu.strided_load %arg3[%c1_6, %c0_7] {strides = array<i32: 2, 1>} : memref<16x32xf32, #tpu.memory_space<vmem>>, vector<8x32xf32>
    %7 = arith.maximumf %5, %6 : vector<8x32xf32>
    %8 = tpu.transpose %7, [1, 0] : vector<8x32xf32> -> vector<32x8xf32>
    %c0_8 = arith.constant 0 : index
    %c0_9 = arith.constant 0 : index
    %9 = vector.load %arg2[%c0_8, %c0_9] : memref<32x8xf32, #tpu.memory_space<vmem>>, vector<32x8xf32>
    tpu.vector_store %arg2[%c0_8, %c0_9], %8 {strides = array<i32>} : memref<32x8xf32, #tpu.memory_space<vmem>>, vector<32x8xf32>,
    return
  }
  func.func @transform_0(%arg0: i32) -> (i32, i32) {
    %c0_i32 = arith.constant 0 : i32
    %c0_i32_0 = arith.constant 0 : i32
    return %arg0, %c0_i32 : i32, i32
  }
  func.func @transform_1(%arg0: i32) -> (i32, i32) {
    %c0_i32 = arith.constant 0 : i32
    %c0_i32_0 = arith.constant 0 : i32
    return %arg0, %c0_i32 : i32, i32
  }
}

</mosaic_0001>

<bundles_post_ra>
// kernel: tpu_custom_call.1
= control target key start
LH: loop header
LB: loop body
LE: loop exit
PB: predicated region body
PF: predicated region fallthrough
CT: control target
= control target key end

     0   :  { %s316_s6 = smov 0   ;;  %s337_s0 = inlined_call_operand.vmem [shape: f32[128,16], index: 0, kind: input, shape index: {}]   ;;  %s338_s1 = inlined_call_operand.vmem [shape: f32[64,8], index: 1, kind: output, shape index: {}]  }
   0x1 LB: > { %s271_s7 = sadd.s32 4294967295, %s304_s6   ;;  %p275_p0 = scmp.ge.s32.totalorder %s304_s6, 1  ;;  %s304_s6 = sphi %s316_s6, %s11_s6  }
   0x2   : > { %p88_p1 = scmp.lt.s32.totalorder %s304_s6, 3 }
   0x4   : > { %p89_p2 = pnand %p275_p0, %p88_p1 }
   0x5   : > { %s276_s8 = sshll.u32 (!%p89_p2), %s271_s7, 3  ;;  %s278_s13 = sshll.u32 (!%p89_p2), %s271_s7, 2 }
   0x6   : > { %92 = sbr.rel (%p89_p2) target bundleno = 390 (0x186), region = 24  ;;  %p109_p3 = scmp.lt.s32.totalorder (!%p89_p2), %s276_s8, 15 }
   0x7   : > { %p115_p4 = scmp.lt.s32.totalorder (!%p89_p2), %s278_s13, 7 }
   0xb   : > { %s340_s8 = smov (!%p109_p3, %s276_s8), 15  ;;  %vm171_vm0 = vcmask 261120   ;;  %s342_s13 = smov (!%p115_p4, %s278_s13), 7  ;;  %vm210_vm1 = vcmask 64512  }
   0xc   : > { %s277_s9 = sshll.u32 %s340_s8, 3  ;;  %s279_s14 = sshll.u32 %s342_s13, 3 }
   0xd   : > { %s112_s12 = scalar_lea.vmem %s337_s0, %s277_s9  ;;  %s118_s17 = scalar_lea.vmem %s338_s1, %s279_s14 }
   0xe   : > { %v120_v0 = vld [vmem:[%s112_s12] ss:$2 sm:$0xff]  ;;  %v283_v1 = vld [vmem:[%s112_s12 + $0x1] ss:$2 sm:$0xff]  ;;  %v280_v3 = vld [vmem:[%s112_s12 + $0x10] ss:$2 sm:$0xff] }
   0xf   : > { %v135_v2 = vmax.f32 %v120_v0, %v283_v1  ;;  %v284_v4 = vld [vmem:[%s112_s12 + $0x11] ss:$2 sm:$0xff]  ;;  %v281_v6 = vld [vmem:[%s112_s12 + $0x20] ss:$2 sm:$0xff]  ;;  %v285_v7 = vld [vmem:[%s112_s12 + $0x21] ss:$2 sm:$0xff] }
  0x10   : > { %v136_v5 = vmax.f32 %v280_v3, %v284_v4  ;;  %v137_v8 = vmax.f32 %v281_v6, %v285_v7  ;;  %v282_v9 = vld [vmem:[%s112_s12 + $0x30] ss:$2 sm:$0xff]  ;;  %v286_v10 = vld [vmem:[%s112_s12 + $0x31] ss:$2 sm:$0xff] }
  0x11   : > { %139 = vxpose.xlu0.b32.start [1/4] (short) (narrow) %v135_v2, 16  ;;  %v138_v11 = vmax.f32 %v282_v9, %v286_v10 }
  0x19   : > { %140 = vxpose.xlu0.b32.cont [2/4] (short) (narrow) %v136_v5, 16 }
  0x21   : > { %141 = vxpose.xlu0.b32.cont [3/4] (short) (narrow) %v137_v8, 16 }
  0x29   : > { %142 = vxpose.xlu0.b32.end [4/4] (short) (narrow) %v138_v11, 16 }
  0xb5   : > { %v155_v12 = vpop.trf.xlu0 }
  0xb6   : > { %172 = vst.msk [vmem:[#allocation2] sm:$0xff] %vm171_vm0, %v155_v12 }
  0xbd   : > { %v156_v13 = vpop.trf.xlu0 }
  0xbe   : > { %173 = vst.msk [vmem:[#allocation2 + $0x8] sm:$0xff] %vm171_vm0, %v156_v13 }
  0xc5   : > { %v174_v14 = vld [vmem:[#allocation2] ss:$2 sm:$0xff]  ;;  %v176_v15 = vld [vmem:[#allocation2 + $0x1] ss:$2 sm:$0xff] }
  0xc6   : > { %v177_v16 = vmax.f32 %v174_v14, %v176_v15 }
  0xc8   : > { %178 = vxpose.xlu1.b32.start.end [1/1] (short) (narrow) %v177_v16, 32 }
 0x16c   : > { %v194_v17 = vpop.trf.xlu1 }
 0x16d   : > { %211 = vst.msk [vmem:[%s118_s17] sm:$0xff] %vm210_vm1, %v194_v17 }
 0x174   : > { %v195_v18 = vpop.trf.xlu1 }
 0x175   : > { %212 = vst.msk [vmem:[%s118_s17 + $0x8] sm:$0xff] %vm210_vm1, %v195_v18 }
 0x17c   : > { %v196_v19 = vpop.trf.xlu1 }
 0x17d   : > { %213 = vst.msk [vmem:[%s118_s17 + $0x10] sm:$0xff] %vm210_vm1, %v196_v19 }
 0x184   : > { %v197_v20 = vpop.trf.xlu1 }
 0x185   : > { %214 = vst.msk [vmem:[%s118_s17 + $0x18] sm:$0xff] %vm210_vm1, %v197_v20 }
 0x186 PF: > { %s11_s6 = sadd.s32 1, %s304_s6  }
 0x187   : > { %p8_p5 = scmp.ge.s32.totalorder %s11_s6, 4  }
 0x189   :  { %10 = sbr.rel (!%p8_p5) target bundleno = 1 (0x1), region = 62 }

</bundles_post_ra>
